<compile_context>
chip_gen: v7x
topology: tpu7x:2x2x1
jax: 0.10.0
libtpu: 0.0.40
codegen_flags: <defaults>
</compile_context>

<pallas_src>
import math
from functools import partial

import jax
import jax.numpy as jnp
from jax import lax
from jax.experimental import pallas as pl
from jax.experimental.pallas import tpu as pltpu

LN_EPS = 1e-12  # ALBERT layer-norm epsilon


def _layernorm(x, gamma, beta):
    mean = jnp.mean(x, axis=-1, keepdims=True)
    var = jnp.mean((x - mean) ** 2, axis=-1, keepdims=True)
    return (x - mean) * lax.rsqrt(var + LN_EPS) * gamma + beta


def _gelu_new(x):
    # ALBERT's "gelu_new" (tanh approximation)
    c = math.sqrt(2.0 / math.pi)
    return 0.5 * x * (1.0 + jnp.tanh(c * (x + 0.044715 * x * x * x)))


def _is_v5e():
    try:
        kind = jax.devices()[0].device_kind.lower()
    except Exception:
        return False
    return ("v5e" in kind) or ("v5 lite" in kind) or ("v5litepod" in kind)


def _vmem_limit_bytes():
    # ~75% of physical VMEM: ~48 MiB on v7x, ~96 MiB on v5e/v6e.
    try:
        cap = pltpu.get_tpu_info().vmem_capacity_bytes
    except Exception:
        cap = 64 * 1024 * 1024
    return min(int(cap * 3 // 4), 100 * 1024 * 1024)


def _pick_ff_chunk(I):
    if I <= 1024:
        return I
    for c in (1024, 768, 512, 384, 256, 128):
        if I % c == 0:
            return c
    return I


# ---------------------------------------------------------------------------
# Kernel 1: embedding LayerNorm + embedding_hidden_mapping_in  (E -> H)
# Rows are B*S (batch folded into the matmul row dimension).
# TODO(synk): fuse this into the encoder kernel's layer==0 path (write x_scr
# directly) to skip one HBM round trip of the [B*S, H] f32 hidden state.
# ---------------------------------------------------------------------------
def emb_map_kernel(emb_ref, g_ref, b_ref, w_ref, wb_ref, o_ref):
    e = emb_ref[...]                                        # [TN, E] f32
    en = _layernorm(e, g_ref[...], b_ref[...])
    o_ref[...] = (
        jnp.dot(en.astype(jnp.bfloat16), w_ref[...],
                preferred_element_type=jnp.float32) + wb_ref[...]
    )


def run_emb_map(emb_flat, ln_g, ln_b, w_map, b_map):
    N, E = emb_flat.shape
    H = w_map.shape[1]
    row_tile = N
    if N > 1024:
        for cand in (1024, 512, 256, 128):
            if N % cand == 0:
                row_tile = cand
                break
    assert N % row_tile == 0

    def const_spec(shape):
        # constant across the row grid -> single-buffered, DMA'd once
        return pl.BlockSpec(shape, lambda i: (0, 0), pipeline_mode=pl.Buffered(1))

    cost = pl.CostEstimate(
        flops=2 * N * E * H,
        transcendentals=N,
        bytes_accessed=N * E * 4 + N * H * 4 + E * H * 2 + (2 * E + 2 * H) * 4,
    )
    return pl.pallas_call(
        emb_map_kernel,
        out_shape=jax.ShapeDtypeStruct((N, H), jnp.float32),
        grid=(N // row_tile,),
        in_specs=[
            pl.BlockSpec((row_tile, E), lambda i: (i, 0)),
            const_spec((1, E)),
            const_spec((1, E)),
            const_spec((E, H)),
            const_spec((1, H)),
        ],
        out_specs=pl.BlockSpec((row_tile, H), lambda i: (i, 0)),
        compiler_params=pltpu.CompilerParams(
            dimension_semantics=("parallel",),
            vmem_limit_bytes=_vmem_limit_bytes(),
        ),
        cost_estimate=cost,
    )(emb_flat, ln_g, ln_b, w_map, b_map)


# ---------------------------------------------------------------------------
# Kernel 2: the full ALBERT encoder stack in one pallas_call.
# grid = (B // Bt, num_layers): batch blocks are "parallel" (megacore), layers are
# "arbitrary". The hidden state (Bt*S rows) is resident in a VMEM scratch across the
# layer axis; the shared weights use constant index_maps + Buffered(1) so they are
# DMA'd exactly once and single-buffered.
# ---------------------------------------------------------------------------
def albert_encoder_kernel(x_ref, mask_ref,
                          wq_ref, bq_ref, wk_ref, bk_ref, wv_ref, bv_ref,
                          wo_ref, bo_ref, g1_ref, b1_ref,
                          wi_ref, bi_ref, wf_ref, bf_ref, g2_ref, b2_ref,
                          o_ref, x_scr, ctx_scr,
                          *, num_heads, batch_per_step, seq_len, ff_chunk,
                          use_bf16_exp):
    layer = pl.program_id(1)

    # Layer 0: bring this batch block's hidden state into the resident scratch.
    @pl.when(layer == 0)
    def _():
        x_scr[...] = x_ref[...]

    x = x_scr[...]                                          # [M, H] f32, M = Bt*S
    M, H = x.shape
    S = seq_len
    Bt = batch_per_step
    hd = H // num_heads
    group = max(1, 128 // hd)                               # heads per lane-dense store
    if num_heads % group != 0:
        group = 1
    n_groups = num_heads // group
    gw = group * hd                                         # store width (128 if hd<=128)
    scale = 1.0 / math.sqrt(hd)

    # Full-width QKV projections (K = H), bf16 MXU inputs, f32 accumulation.
    xb = x.astype(jnp.bfloat16)
    q = jnp.dot(xb, wq_ref[...], preferred_element_type=jnp.float32) + bq_ref[...]
    k = jnp.dot(xb, wk_ref[...], preferred_element_type=jnp.float32) + bk_ref[...]
    v = jnp.dot(xb, wv_ref[...], preferred_element_type=jnp.float32) + bv_ref[...]

    qb = (q * scale).astype(jnp.bfloat16)                   # fold 1/sqrt(hd) into q
    vb = v.astype(jnp.bfloat16)

    # Attention is per batch element; matmuls above were over the folded M rows.
    # TODO(synk): for very long S (>=2048) tile K/V with an online softmax instead of
    # materializing the full [S, S] score matrix per head.
    for bb in range(Bt):
        r0 = bb * S
        mask_row = mask_ref[bb]                              # [1, S] additive mask
        q_bb = qb[r0:r0 + S, :]                              # [S, H] bf16 (scaled)
        v_bb = vb[r0:r0 + S, :]
        # Hoisted K transpose: one f32 transpose per batch element per layer; heads
        # are then sublane slices of kT (no per-head transpose in the loop).
        kT_bb = k[r0:r0 + S, :].T.astype(jnp.bfloat16)       # [H, S]
        for g in range(n_groups):
            ctx_parts = []
            for hh in range(group):
                lo = (g * group + hh) * hd
                q_h = q_bb[:, lo:lo + hd]                    # [S, hd]
                kT_h = kT_bb[lo:lo + hd, :]                  # [hd, S]
                scores = jnp.dot(q_h, kT_h,
                                 preferred_element_type=jnp.float32)
                scores = scores + mask_row                   # [S,S] + [1,S]
                m = jnp.max(scores, axis=-1, keepdims=True)
                if use_bf16_exp:
                    # bf16 exp: ~2x EUP throughput on v6e/v7x; row sum stays f32.
                    p = jnp.exp((scores - m).astype(jnp.bfloat16))
                    denom = jnp.sum(p, axis=-1, keepdims=True, dtype=jnp.float32)
                else:
                    p_f32 = jnp.exp(scores - m)
                    denom = jnp.sum(p_f32, axis=-1, keepdims=True)
                    p = p_f32.astype(jnp.bfloat16)
                inv = pl.reciprocal(denom, approx=True)      # EUP slot, ~free
                # Normalize after the PV matmul ([S,hd] scale instead of [S,S]).
                ctx_h = jnp.dot(p, v_bb[:, lo:lo + hd],
                                preferred_element_type=jnp.float32) * inv
                ctx_parts.append(ctx_h)
            ctx_g = ctx_parts[0] if group == 1 else jnp.concatenate(ctx_parts, axis=-1)
            # Lane-dense (gw-wide) store of the whole head group.
            ctx_scr[r0:r0 + S, g * gw:(g + 1) * gw] = ctx_g
    # TODO(synk): if bundle dumps show spills at num_heads=12, switch the group loop to
    # lax.fori_loop with pl.ds slices to bound live ranges.

    attn = jnp.dot(ctx_scr[...].astype(jnp.bfloat16), wo_ref[...],
                   preferred_element_type=jnp.float32) + bo_ref[...]

    h1 = _layernorm(x + attn, g1_ref[...], b1_ref[...])

    # FFN tiled over the intermediate dimension: never materializes the full [M, I]
    # activation (f32 + bf16 copies), only one [M, ff_chunk] chunk at a time.
    h1b = h1.astype(jnp.bfloat16)
    I = wi_ref.shape[1]
    ff_acc = None
    for c0 in range(0, I, ff_chunk):
        ffc = jnp.dot(h1b, wi_ref[:, c0:c0 + ff_chunk],
                      preferred_element_type=jnp.float32) + bi_ref[:, c0:c0 + ff_chunk]
        ffc = _gelu_new(ffc)
        part = jnp.dot(ffc.astype(jnp.bfloat16), wf_ref[c0:c0 + ff_chunk, :],
                       preferred_element_type=jnp.float32)
        ff_acc = part if ff_acc is None else ff_acc + part
    ff = ff_acc + bf_ref[...]

    x_new = _layernorm(h1 + ff, g2_ref[...], b2_ref[...])
    x_scr[...] = x_new                                      # carry to next layer
    # Write the output every layer: the block is VMEM-resident across the layer axis,
    # so this is a cheap copy and removes any dependence on output-revisit semantics.
    o_ref[...] = x_new


def run_albert_encoder(x_flat, mask_add, p, num_heads, num_layers, batch, seq_len):
    BS, H = x_flat.shape
    B, S = batch, seq_len
    assert BS == B * S and H % num_heads == 0
    I = p["wi"].shape[1]

    # Batch blocking: fold enough batch elements so M = Bt*S >= 256 (MXU fill on
    # v6e/v7x), as long as Bt divides B.
    target = min(B, max(1, -(-256 // S)))
    Bt = 1
    for cand in range(target, 0, -1):
        if B % cand == 0:
            Bt = cand
            break
    M = Bt * S
    ff_chunk = _pick_ff_chunk(I)
    # bf16 exp only where it helps (v6e/v7x EUP-bound attention) and shapes are sane.
    use_bf16_exp = (S >= 128) and (not _is_v5e())

    kernel = partial(albert_encoder_kernel, num_heads=num_heads,
                     batch_per_step=Bt, seq_len=S, ff_chunk=ff_chunk,
                     use_bf16_exp=use_bf16_exp)

    def const2(shape):
        # Weights/biases: constant index_map -> DMA'd once; Buffered(1) -> no wasted
        # second pipeline buffer (halves weight VMEM footprint).
        return pl.BlockSpec(shape, lambda b, l: (0, 0), pipeline_mode=pl.Buffered(1))

    in_specs = [
        pl.BlockSpec((M, H), lambda b, l: (b, 0)),           # x (read at layer 0)
        pl.BlockSpec((Bt, 1, S), lambda b, l: (b, 0, 0)),    # additive mask
        const2((H, H)), const2((1, H)),                      # wq, bq
        const2((H, H)), const2((1, H)),                      # wk, bk
        const2((H, H)), const2((1, H)),                      # wv, bv
        const2((H, H)), const2((1, H)),                      # wo, bo
        const2((1, H)), const2((1, H)),                      # attn LN gamma/beta
        const2((H, I)), const2((1, I)),                      # wi, bi
        const2((I, H)), const2((1, H)),                      # wf, bf
        const2((1, H)), const2((1, H)),                      # ffn LN gamma/beta
    ]

    flops_per_layer = 2 * B * S * (4 * H * H + 2 * H * I) + 4 * B * S * S * H
    cost = pl.CostEstimate(
        flops=num_layers * flops_per_layer,
        transcendentals=num_layers * B * (num_heads * S * S + S * I),
        bytes_accessed=(4 * H * H + 2 * H * I) * 2           # bf16 weights (once)
        + 2 * B * S * H * 4                                   # x in + out
        + B * S * 4,                                          # mask
    )

    out = pl.pallas_call(
        kernel,
        out_shape=jax.ShapeDtypeStruct((B * S, H), jnp.float32),
        grid=(B // Bt, num_layers),
        in_specs=in_specs,
        out_specs=pl.BlockSpec((M, H), lambda b, l: (b, 0)),
        scratch_shapes=[
            pltpu.VMEM((M, H), jnp.float32),   # resident hidden state across layers
            pltpu.VMEM((M, H), jnp.float32),   # per-head-group context slab
        ],
        compiler_params=pltpu.CompilerParams(
            dimension_semantics=("parallel", "arbitrary"),
            vmem_limit_bytes=_vmem_limit_bytes(),
        ),
        cost_estimate=cost,
    )(x_flat, mask_add,
      p["wq"], p["bq"], p["wk"], p["bk"], p["wv"], p["bv"],
      p["wo"], p["bo"], p["g1"], p["b1"],
      p["wi"], p["bi"], p["wf"], p["bf"], p["g2"], p["b2"])
    return out


# ---------------------------------------------------------------------------
# MME2E_T.forward equivalent: returns last_hidden_state [B, S, H]
# ---------------------------------------------------------------------------
def mme2e_t_forward(params, input_ids, attention_mask, token_type_ids,
                    num_layers, num_heads):
    B, S = input_ids.shape
    # glue: embedding gathers (no clean Pallas equivalent at these sizes)
    word = jnp.take(params["word_emb"], input_ids, axis=0)          # [B, S, E]
    pos = params["pos_emb"][:S][None, :, :]                         # [1, S, E]
    tok = jnp.take(params["tok_emb"], token_type_ids, axis=0)       # [B, S, E]
    emb = (word + pos + tok).reshape(B * S, -1)                     # fold B*S rows

    x = run_emb_map(emb, params["emb_ln_g"], params["emb_ln_b"],
                    params["w_map"], params["b_map"])               # [B*S, H]
    H = x.shape[-1]

    mask_add = (1.0 - attention_mask.astype(jnp.float32))[:, None, :] * -1e9  # [B,1,S]

    # ALBERT shares one layer's weights; the whole stack runs in one pallas_call.
    out_flat = run_albert_encoder(x, mask_add, params["layer"],
                                  num_heads, num_layers, B, S)
    return out_flat.reshape(B, S, H)  # last_hidden_state
    # TODO(synk): code after the first `return` in the PyTorch forward
    # (get_cls branch / text_feature_affine) is unreachable dead code.


def init_params(key, vocab, max_pos, type_vocab, E, H, I):
    ks = jax.random.split(key, 10)

    def nb(k, shape):  # bf16 matmul weights
        return (0.02 * jax.random.normal(k, shape)).astype(jnp.bfloat16)

    def nf(k, shape):  # f32 embeddings
        return (0.02 * jax.random.normal(k, shape)).astype(jnp.float32)

    return {
        "word_emb": nf(ks[0], (vocab, E)),
        "pos_emb": nf(ks[1], (max_pos, E)),
        "tok_emb": nf(ks[2], (type_vocab, E)),
        "emb_ln_g": jnp.ones((1, E), jnp.float32),
        "emb_ln_b": jnp.zeros((1, E), jnp.float32),
        "w_map": nb(ks[3], (E, H)),
        "b_map": jnp.zeros((1, H), jnp.float32),
        "layer": {
            "wq": nb(ks[4], (H, H)), "bq": jnp.zeros((1, H), jnp.float32),
            "wk": nb(ks[5], (H, H)), "bk": jnp.zeros((1, H), jnp.float32),
            "wv": nb(ks[6], (H, H)), "bv": jnp.zeros((1, H), jnp.float32),
            "wo": nb(ks[7], (H, H)), "bo": jnp.zeros((1, H), jnp.float32),
            "g1": jnp.ones((1, H), jnp.float32), "b1": jnp.zeros((1, H), jnp.float32),
            "wi": nb(ks[8], (H, I)), "bi": jnp.zeros((1, I), jnp.float32),
            "wf": nb(ks[9], (I, H)), "bf": jnp.zeros((1, H), jnp.float32),
            "g2": jnp.ones((1, H), jnp.float32), "b2": jnp.zeros((1, H), jnp.float32),
        },
    }


if __name__ == "__main__":
    # small synthetic ALBERT config (H a multiple of 128 so stores are lane-dense)
    B, S = 2, 8
    E, H, I = 32, 128, 256
    NUM_HEADS, NUM_LAYERS = 4, 2
    VOCAB, MAX_POS, TYPE_VOCAB = 50, 16, 2

    key = jax.random.PRNGKey(0)
    pkey, ikey = jax.random.split(key)
    params = init_params(pkey, VOCAB, MAX_POS, TYPE_VOCAB, E, H, I)

    # `text` dict equivalent: input_ids / attention_mask / token_type_ids
    input_ids = jax.random.randint(ikey, (B, S), 0, VOCAB, dtype=jnp.int32)
    attention_mask = jnp.ones((B, S), jnp.int32).at[1, 6:].set(0)
    token_type_ids = jnp.zeros((B, S), jnp.int32)

    out = mme2e_t_forward(params, input_ids, attention_mask, token_type_ids,
                          NUM_LAYERS, NUM_HEADS)
    out = jax.block_until_ready(out)
    assert out.shape == (B, S, H) and out.dtype == jnp.float32
    assert bool(jnp.all(jnp.isfinite(out)))
    print("KERNEL_OK")
</pallas_src>

<mosaic_0001>
module attributes {stable_mosaic.version = 11 : i64} {
  func.func @emb_map_kernel(%arg0: i32, %arg1: memref<16x32xf32, #tpu.memory_space<vmem>>, %arg2: memref<1x32xf32, #tpu.memory_space<vmem>>, %arg3: memref<1x32xf32, #tpu.memory_space<vmem>>, %arg4: memref<32x128xbf16, #tpu.memory_space<vmem>>, %arg5: memref<1x128xf32, #tpu.memory_space<vmem>>, %arg6: memref<16x128xf32, #tpu.memory_space<vmem>>) attributes {dimension_semantics = [#tpu.dimension_semantics<parallel>], iteration_bounds = array<i64: 1>, scalar_prefetch = 0 : i64, scratch_operands = 0 : i64, tpu.core_type = #tpu.core_type<tc>, window_params = [{transform_indices = @transform_0, window_bounds = array<i64: 16, 32>}, {pipeline_mode = #tpu.pipeline_mode<synchronous>, transform_indices = @transform_1, window_bounds = array<i64: 1, 32>}, {pipeline_mode = #tpu.pipeline_mode<synchronous>, transform_indices = @transform_2, window_bounds = array<i64: 1, 32>}, {pipeline_mode = #tpu.pipeline_mode<synchronous>, transform_indices = @transform_3, window_bounds = array<i64: 32, 128>}, {pipeline_mode = #tpu.pipeline_mode<synchronous>, transform_indices = @transform_4, window_bounds = array<i64: 1, 128>}, {transform_indices = @transform_5, window_bounds = array<i64: 16, 128>}]} {
    %c0 = arith.constant 0 : index
    %c0_0 = arith.constant 0 : index
    %0 = vector.load %arg1[%c0, %c0_0] : memref<16x32xf32, #tpu.memory_space<vmem>>, vector<16x32xf32>
    %c0_1 = arith.constant 0 : index
    %c0_2 = arith.constant 0 : index
    %1 = vector.load %arg2[%c0_1, %c0_2] : memref<1x32xf32, #tpu.memory_space<vmem>>, vector<1x32xf32>
    %c0_3 = arith.constant 0 : index
    %c0_4 = arith.constant 0 : index
    %2 = vector.load %arg3[%c0_3, %c0_4] : memref<1x32xf32, #tpu.memory_space<vmem>>, vector<1x32xf32>
    %cst = arith.constant dense<0.000000e+00> : vector<16xf32>
    %3 = vector.multi_reduction <add>, %0, %cst [1] : vector<16x32xf32> to vector<16xf32>
    %4 = vector.shape_cast %3 : vector<16xf32> to vector<16x1xf32>
    %cst_5 = arith.constant 3.200000e+01 : f32
    %5 = vector.broadcast %cst_5 : f32 to vector<16x1xf32>
    %6 = arith.divf %4, %5 : vector<16x1xf32>
    %7 = vector.broadcast %6 : vector<16x1xf32> to vector<16x32xf32>
    %8 = arith.subf %0, %7 : vector<16x32xf32>
    %9 = arith.mulf %8, %8 : vector<16x32xf32>
    %cst_6 = arith.constant dense<0.000000e+00> : vector<16xf32>
    %10 = vector.multi_reduction <add>, %9, %cst_6 [1] : vector<16x32xf32> to vector<16xf32>
    %11 = vector.shape_cast %10 : vector<16xf32> to vector<16x1xf32>
    %cst_7 = arith.constant 3.200000e+01 : f32
    %12 = vector.broadcast %cst_7 : f32 to vector<16x1xf32>
    %13 = arith.divf %11, %12 : vector<16x1xf32>
    %14 = vector.broadcast %6 : vector<16x1xf32> to vector<16x32xf32>
    %15 = arith.subf %0, %14 : vector<16x32xf32>
    %cst_8 = arith.constant 9.99999996E-13 : f32
    %16 = vector.broadcast %cst_8 : f32 to vector<16x1xf32>
    %17 = arith.addf %13, %16 : vector<16x1xf32>
    %18 = math.rsqrt %17 : vector<16x1xf32>
    %19 = vector.broadcast %18 : vector<16x1xf32> to vector<16x32xf32>
    %20 = arith.mulf %15, %19 : vector<16x32xf32>
    %21 = vector.broadcast %1 : vector<1x32xf32> to vector<16x32xf32>
    %22 = arith.mulf %20, %21 : vector<16x32xf32>
    %23 = vector.broadcast %2 : vector<1x32xf32> to vector<16x32xf32>
    %24 = arith.addf %22, %23 : vector<16x32xf32>
    %25 = arith.truncf %24 : vector<16x32xf32> to vector<16x32xbf16>
    %c0_9 = arith.constant 0 : index
    %c0_10 = arith.constant 0 : index
    %26 = vector.load %arg4[%c0_9, %c0_10] : memref<32x128xbf16, #tpu.memory_space<vmem>>, vector<32x128xbf16>
    %cst_11 = arith.constant dense<0.000000e+00> : vector<16x128xf32>
    %27 = tpu.matmul %25, %26, %cst_11 {dimension_numbers = #tpu.dot_dimension_numbers<[1], [0], [0], [1], [0, 0, 1, 1], [], []>} : vector<16x32xbf16>, vector<32x128xbf16>, vector<16x128xf32> -> vector<16x128xf32>
    %c0_12 = arith.constant 0 : index
    %c0_13 = arith.constant 0 : index
    %28 = vector.load %arg5[%c0_12, %c0_13] : memref<1x128xf32, #tpu.memory_space<vmem>>, vector<1x128xf32>
    %29 = vector.broadcast %28 : vector<1x128xf32> to vector<16x128xf32>
    %30 = arith.addf %27, %29 : vector<16x128xf32>
    %c0_14 = arith.constant 0 : index
    %c0_15 = arith.constant 0 : index
    %31 = vector.load %arg6[%c0_14, %c0_15] : memref<16x128xf32, #tpu.memory_space<vmem>>, vector<16x128xf32>
    tpu.vector_store %arg6[%c0_14, %c0_15], %30 {strides = array<i32>} : memref<16x128xf32, #tpu.memory_space<vmem>>, vector<16x128xf32>,
    return
  }
  func.func @transform_0(%arg0: i32) -> (i32, i32) {
    %c0_i32 = arith.constant 0 : i32
    %c0_i32_0 = arith.constant 0 : i32
    return %arg0, %c0_i32 : i32, i32
  }
  func.func @transform_1(%arg0: i32) -> (i32, i32) {
    %c0_i32 = arith.constant 0 : i32
    %c0_i32_0 = arith.constant 0 : i32
    %c0_i32_1 = arith.constant 0 : i32
    return %c0_i32, %c0_i32_0 : i32, i32
  }
  func.func @transform_2(%arg0: i32) -> (i32, i32) {
    %c0_i32 = arith.constant 0 : i32
    %c0_i32_0 = arith.constant 0 : i32
    %c0_i32_1 = arith.constant 0 : i32
    return %c0_i32, %c0_i32_0 : i32, i32
  }
  func.func @transform_3(%arg0: i32) -> (i32, i32) {
    %c0_i32 = arith.constant 0 : i32
    %c0_i32_0 = arith.constant 0 : i32
    %c0_i32_1 = arith.constant 0 : i32
    return %c0_i32, %c0_i32_0 : i32, i32
  }
  func.func @transform_4(%arg0: i32) -> (i32, i32) {
    %c0_i32 = arith.constant 0 : i32
    %c0_i32_0 = arith.constant 0 : i32
    %c0_i32_1 = arith.constant 0 : i32
    return %c0_i32, %c0_i32_0 : i32, i32
  }
  func.func @transform_5(%arg0: i32) -> (i32, i32) {
    %c0_i32 = arith.constant 0 : i32
    %c0_i32_0 = arith.constant 0 : i32
    return %arg0, %c0_i32 : i32, i32
  }
}

</mosaic_0001>

<bundles_post_ra>
// kernel: tpu_custom_call.1
= control target key start
LH: loop header
LB: loop body
LE: loop exit
PB: predicated region body
PF: predicated region fallthrough
CT: control target
= control target key end

     0   :  { %10 = vsyncpa [#allocation3], 0  ;;  %s385_s0 = inlined_call_operand.hbm [shape: f32[16,32], index: 0, kind: input, shape index: {}]   ;;  %s386_s1 = inlined_call_operand.vmem [shape: f32[1,32], index: 1, kind: input, shape index: {}]   ;;  %s387_s2 = inlined_call_operand.vmem [shape: f32[1,32], index: 2, kind: input, shape index: {}]   ;;  %s388_s3 = inlined_call_operand.hbm [shape: bf16[32,128], index: 3, kind: input, shape index: {}]   ;;  %s389_s4 = inlined_call_operand.vmem [shape: f32[1,128], index: 4, kind: input, shape index: {}]   ;;  %s390_s5 = inlined_call_operand.hbm [shape: f32[16,128], index: 5, kind: output, shape index: {}]  }
   0x1   :  { %11 = vsyncpa [#allocation6], 0 }
   0x2   :  { %12 = vsyncpa [#allocation4], 0  ;;  %s290_s18 = smov [#allocation2]   ;;  %s218_s22 = scalar_lea.hbm %s385_s0, 256 }
   0x3   :  { %s18_s19 = sshll.u32 %s290_s18, 4  ;;  %p219_p0 = scmp.ne.s32.totalorder %s385_s0, %s218_s22  ;;  %s19_s19 = int_to_ptr.vmem [resolvable:$true] %s18_s19 }
   0x4   :  { %p222_p1 = scmp.lt.u32.totalorder %s218_s22, %s385_s0 }
   0x6   :  { %p224_p2 = pnand %p222_p1, %p219_p0 }
   0x8   :  { %227 = shalt.err (!%p224_p2)
}
   0x9   :  { %s228_s27 = scalar_lea.vmem %s19_s19, 256  ;;  %p233_p4 = scmp.lt.s32.totalorder %s19_s19, %s19_s19 }
   0xa   :  { %p229_p3 = scmp.ne.s32.totalorder %s19_s19, %s228_s27  ;;  %p234_p5 = scmp.lt.s32.totalorder %s228_s27, %s228_s27 }
   0xc   :  { %p235_p6 = por %p234_p5, %p233_p4 }
   0xe   :  { %p236_p7 = pnand %p235_p6, %p229_p3 }
  0x10   :  { %239 = shalt.err (!%p236_p7)
}
  0x11   :  { %s291_s28 = smov 128   ;;  %s292_s29 = smov 8  }
  0x12   :  { %24 = dma.hbm_to_vmem [thread:$0]  %s385_s0, 256, %s19_s19, [#allocation3], %s291_s28, %s291_s28, %s292_s29  }
  0x13   :  { %s293_s7 = smov [#allocation5]   ;;  %s240_s11 = scalar_lea.hbm %s388_s3, 256 }
  0x14   :  { %s34_s8 = sshll.u32 %s293_s7, 4  ;;  %p241_p8 = scmp.ne.s32.totalorder %s388_s3, %s240_s11  ;;  %s35_s8 = int_to_ptr.vmem [resolvable:$true] %s34_s8 }
  0x15   :  { %p244_p9 = scmp.lt.u32.totalorder %s240_s11, %s388_s3 }
  0x17   :  { %p246_p10 = pnand %p244_p9, %p241_p8 }
  0x19   :  { %249 = shalt.err (!%p246_p10)
}
  0x1a   :  { %s250_s16 = scalar_lea.vmem %s35_s8, 256  ;;  %p255_p12 = scmp.lt.s32.totalorder %s35_s8, %s35_s8 }
  0x1b   :  { %p251_p11 = scmp.ne.s32.totalorder %s35_s8, %s250_s16  ;;  %p256_p13 = scmp.lt.s32.totalorder %s250_s16, %s250_s16 }
  0x1d   :  { %p257_p0 = por %p256_p13, %p255_p12 }
  0x1f   :  { %p258_p1 = pnand %p257_p0, %p251_p11 }
  0x21   :  { %261 = shalt.err (!%p258_p1)
}
  0x22   :  { %s294_s0 = smov 64   ;;  %s295_s17 = smov 4  }
  0x23   :  { %40 = dma.hbm_to_vmem [thread:$0]  %s388_s3, 256, %s35_s8, [#allocation6], %s294_s0, %s294_s0, %s295_s17  }
  0x24   :  { %284 = dma.done.wait [#allocation3], 256  }
  0x25   :  { %285 = vsyncadd [#allocation3], 4294967040 }
  0x26   :  { %286 = dma.done.wait [#allocation6], 256  }
  0x27   :  { %287 = vsyncadd [#allocation6], 4294967040  ;;  %vm54_vm0 = vcmask 261120   ;;  %v50_v0 = vld [vmem:[#allocation2] sm:$0xff]  ;;  %v51_v1 = vld [vmem:[#allocation2 + $0x8] sm:$0xff]  ;;  %v296_v15 = vmov 0.0  }
  0x28   :  { %v55_v2 = vsel %vm54_vm0, %v50_v0, 0.0  ;;  %v58_v3 = vsel %vm54_vm0, %v51_v1, 0.0  ;;  %v212_v14 = vld [vmem:[#allocation5] sm:$0xff]   ;;  %195 = vmatprep.subr.bf16.mxu0 %v296_v15  ;;  %v213_v16 = vld [vmem:[#allocation5 + $0x8] sm:$0xff]   ;;  %vm297_vm1 = vmmov 0   ;;  %s298_s25 = smov [#allocation7]  }
  0x29   :  { %56 = vadd.xlane.f32.xlu0 %v55_v2  ;;  %196 = vmatpush3.bf16.msra.mxu0 %v212_v14  ;;  %v186_v25 = vld [vmem:[%s386_s1] ss:$0 sm:$0xff]  ;;  %s173_s1 = sshll.u32 %s298_s25, 4  ;;  %s174_s1 = int_to_ptr.vmem [resolvable:$true] %s173_s1 }
  0x2a   :  { %199 = vmatprep.mubr.msk.bf16.mxu0 %vm297_vm1, %v296_v15  ;;  %197 = vmatprep.subr.bf16.mxu0 %v296_v15  ;;  %v187_v29 = vld [vmem:[%s387_s2] ss:$0 sm:$0xff]  ;;  %s262_s2 = scalar_lea.vmem %s174_s1, 256  ;;  %p267_p3 = scmp.lt.s32.totalorder %s174_s1, %s174_s1 }
  0x2b   :  { %v188_v34 = vld [vmem:[%s389_s4] ss:$0 sm:$0xff]  ;;  %p263_p2 = scmp.ne.s32.totalorder %s174_s1, %s262_s2  ;;  %p268_p4 = scmp.lt.s32.totalorder %s262_s2, %s262_s2 }
  0x2d   :  { %59 = vadd.xlane.f32.xlu0 %v58_v3  ;;  %198 = vmatpush3.bf16.msra.mxu0 %v213_v16  ;;  %p269_p5 = por %p268_p4, %p267_p3 }
  0x2f   :  { %p270_p6 = pnand %p269_p5, %p263_p2 }
  0xb6   :  { %v57_v4 = vpop.xlane.xlu0 %56 }
  0xb7   :  { %v62_v5 = vmul.f32 0.03125, %v57_v4 }
  0xb9   :  { %v64_v6 = vsub.f32 %v50_v0, %v62_v5 }
  0xba   :  { %v60_v7 = vpop.xlane.xlu0 %59 }
  0xbb   :  { %v63_v8 = vmul.f32 0.03125, %v60_v7  ;;  %v66_v9 = vmul.f32 %v64_v6, %v64_v6 }
  0xbd   :  { %v65_v10 = vsub.f32 %v51_v1, %v63_v8  ;;  %v68_v11 = vsel %vm54_vm0, %v66_v9, 0.0 }
  0xbe   :  { %69 = vadd.xlane.f32.xlu1 %v68_v11 }
  0xbf   :  { %v67_v12 = vmul.f32 %v65_v10, %v65_v10 }
  0xc1   :  { %v71_v13 = vsel %vm54_vm0, %v67_v12, 0.0 }
  0xc2   :  { %72 = vadd.xlane.f32.xlu1 %v71_v13 }
 0x14b   :  { %v70_v17 = vpop.xlane.xlu1 %69 }
 0x14c   :  { %v74_v18 = vmul.f32 0.03125, %v70_v17 }
 0x14e   :  { %v76_v19 = vadd.f32 1e-12, %v74_v18 }
 0x14f   :  { %v73_v20 = vpop.xlane.xlu1 %72 }
 0x150   :  { %214 = vrsqrt.f32 %v76_v19  ;;  %v75_v21 = vmul.f32 0.03125, %v73_v20 }
 0x152   :  { %v77_v22 = vadd.f32 1e-12, %v75_v21 }
 0x154   :  { %216 = vrsqrt.f32 %v77_v22 }
 0x15a   :  { %v215_v23 = vpop.eup %214 }
 0x15b   :  { %v80_v24 = vmul.f32 %v215_v23, %v64_v6 }
 0x15d   :  { %v88_v28 = vmul.f32 %v186_v25, %v80_v24 }
 0x15e   :  { %v217_v26 = vpop.eup %216 }
 0x15f   :  { %v81_v27 = vmul.f32 %v217_v26, %v65_v10  ;;  %v96_v31 = vadd.f32 %v187_v29, %v88_v28 }
 0x161   :  { %v89_v30 = vmul.f32 %v186_v25, %v81_v27 }
 0x163   :  { %v97_v32 = vadd.f32 %v187_v29, %v89_v30 }
 0x165   :  { %v98_v33 = vpack.c.bf16 %v97_v32, %v96_v31 }
 0x167   :  { %200 = vmatmul.mubr.msk.bf16.vlgmr.msra.gmra.mrb[0].mxu0 %vm54_vm0, %v98_v33 }
 0x23a   :  { %v159_v35 = vpop.f32.mrb[0].mxu0 }
 0x23b   :  { %v160_v36 = vadd.f32 %v188_v34, %v159_v35  ;;  %v201_v37 = vpop.f32.mrb[1].mxu0 }
 0x23c   :  { %v162_v38 = vpop.f32.mrb[2].mxu0 }
 0x23d   :  { %166 = vst [vmem:[#allocation7] sm:$0xff] %v160_v36  ;;  %v163_v39 = vadd.f32 %v188_v34, %v162_v38  ;;  %v202_v40 = vpop.f32.mrb[3].mxu0 }
 0x23f   :  { %167 = vst [vmem:[#allocation7 + $0x8] sm:$0xff] %v163_v39 }
 0x240   :  { %273 = shalt.err (!%p270_p6)
}
 0x241   :  { %s274_s27 = scalar_lea.hbm %s390_s5, 256 }
 0x242   :  { %p275_p7 = scmp.ne.s32.totalorder %s390_s5, %s274_s27  ;;  %p278_p8 = scmp.lt.u32.totalorder %s274_s27, %s390_s5 }
 0x244   :  { %p280_p9 = pnand %p278_p8, %p275_p7 }
 0x246   :  { %283 = shalt.err (!%p280_p9)
}
 0x247   :  { %179 = dma.vmem_to_hbm [thread:$0]  %s174_s1, 256, %s390_s5, [#allocation4], %s291_s28, %s291_s28, %s292_s29  }
 0x248   :  { %288 = dma.done.wait [#allocation4], 256  }
 0x249   :  { %289 = vsyncadd [#allocation4], 4294967040 }
 0x24a   :  { %183 = vsyncpa [#allocation3], 1 }
 0x24b   :  { %184 = vsyncpa [#allocation6], 1 }
 0x24c   :  { %185 = vsyncpa [#allocation4], 1 }

</bundles_post_ra>
